<compile_context>
chip_gen: v5e
topology: v5e:2x2
jax: 0.10.0
libtpu: 0.0.40
codegen_flags: <defaults>
</compile_context>

<pallas_src>
import functools

import jax
import jax.numpy as jnp
from jax import lax
from jax.experimental import pallas as pl
from jax.experimental.pallas import tpu as pltpu


# ---------------------------- BN folding (host side) ----------------------------

def _fold_params(params, res_conv, eps=1e-6):
    """Fold eval-mode BatchNorm (eps=1e-6) into the conv weights; biases stay."""
    def fold(bn):
        gamma, beta, mean, var = bn
        s = gamma / jnp.sqrt(var + eps)
        return s, beta - mean * s

    s1, b1 = fold(params["bn1"])
    s2, b2 = fold(params["bn2"])
    s3, b3 = fold(params["bn3"])
    f = dict(
        w1=params["w1"] * s1[None, :],                 # (c1, c)
        b1=b1,                                         # (c,)
        w2=params["w2"] * s2[None, None, None, :],     # (3,3,c,c) HWIO
        b2=b2,                                         # (c,)
        w3=params["w3"] * s3[None, :],                 # (c, c2)
        b3=b3,                                         # (c2,)
    )
    if res_conv:
        sr, br = fold(params["bnr"])
        f["wr"] = params["wr"] * sr[None, :]           # (c1, c2)
        f["br"] = br                                   # (c2,)
    return f


def _prepare_operands(params, res_conv):
    """Pad mid channel to a multiple of 8, transpose to channel-major weight
    layouts and cast the matmul operands to bf16 (biases stay f32)."""
    f = _fold_params(params, res_conv)
    c1, c = f["w1"].shape
    c2 = f["w3"].shape[1]
    cp = -(-c // 8) * 8
    pc = cp - c
    bf = jnp.bfloat16

    w1t = jnp.pad(f["w1"].T, ((0, pc), (0, 0))).astype(bf)          # (cp, c1)
    b1 = jnp.pad(f["b1"], (0, pc)).reshape(cp, 1).astype(jnp.float32)

    # (3,3,i,o) -> (o, tap, i) -> pad -> (cp, 9*cp); tap = dy*3 + dx.
    w2t = jnp.transpose(f["w2"], (3, 0, 1, 2)).reshape(c, 9, c)
    w2t = jnp.pad(w2t, ((0, pc), (0, 0), (0, pc)))
    w2_9 = w2t.reshape(cp, 9 * cp).astype(bf)                        # (cp, 9cp)
    b2 = jnp.pad(f["b2"], (0, pc)).reshape(cp, 1).astype(jnp.float32)

    w3t = jnp.pad(f["w3"].T, ((0, 0), (0, pc))).astype(bf)           # (c2, cp)
    b3 = f["b3"].reshape(c2, 1).astype(jnp.float32)

    ops = dict(w1t=w1t, b1=b1, w2=w2_9, b2=b2, w3t=w3t, b3=b3)
    if res_conv:
        ops["wrt"] = f["wr"].T.astype(bf)                            # (c2, c1)
        ops["br"] = f["br"].reshape(c2, 1).astype(jnp.float32)
    return ops, cp


# ---------------------------- fused Pallas kernel ----------------------------

def _shift_lanes(a, d):
    """out[:, p] = a[:, p + d] if 0 <= p + d < HW else 0 (d is a static int)."""
    if d == 0:
        return a
    n = a.shape[-1]
    pad = jnp.zeros((a.shape[0], abs(d)), a.dtype)
    if d > 0:
        return jnp.concatenate([a[:, d:], pad], axis=1)
    return jnp.concatenate([pad, a[:, :n + d]], axis=1)


def _conv_block_kernel(x_ref, msk_ref, w1_ref, b1_ref, w2_ref, b2_ref, w3_ref,
                       b3_ref, *rest, W, c_x2, res_conv, return_x2):
    if res_conv:
        wr_ref, br_ref = rest[:2]
        rest = rest[2:]
    out_ref = rest[0]
    x2_ref = rest[1] if return_x2 else None

    x = x_ref[0]                                        # (c1, HW) bf16, channel-major

    # conv1 (1x1) + bn1 + relu : canonical (cp, c1) @ (c1, HW) on the MXU.
    y1 = jnp.dot(w1_ref[...], x, preferred_element_type=jnp.float32)
    y1 = jnp.maximum(y1 + b1_ref[...], 0.0)             # (cp, HW) f32

    not_first = msk_ref[0:1, :]                         # (1, HW): 0.0 at w == 0
    not_last = msk_ref[1:2, :]                          # (1, HW): 0.0 at w == W-1

    # conv2 (3x3, pad=1, stride=1) as ONE im2col matmul with K = 9*cp.
    # Each tap is a flat lane shift of y1: rows that fall outside the image run
    # off the end of the flat index and become zeros; column wrap-around across
    # row boundaries is killed by the two masks.
    # TODO(synk): pltpu.roll + masks would move the shifts onto the idle XLU slot.
    taps = []
    for dy in range(3):
        for dx in range(3):
            t = _shift_lanes(y1, (dy - 1) * W + (dx - 1))
            if dx == 0:
                t = t * not_first
            elif dx == 2:
                t = t * not_last
            taps.append(t)
    slab = jnp.concatenate(taps, axis=0).astype(jnp.bfloat16)   # (9*cp, HW)
    y2 = jnp.dot(w2_ref[...], slab, preferred_element_type=jnp.float32)
    y2 = jnp.maximum(y2 + b2_ref[...], 0.0)             # (cp, HW) f32  == x2 (padded)

    if return_x2:
        # Lane-dense channel-major store, already in NCHW order.
        x2_ref[0] = y2[:c_x2].astype(x2_ref.dtype)

    # conv3 (1x1) + bn3 + residual + relu, all channel-major.
    y3 = jnp.dot(w3_ref[...], y2.astype(jnp.bfloat16),
                 preferred_element_type=jnp.float32) + b3_ref[...]
    if res_conv:
        r = jnp.dot(wr_ref[...], x, preferred_element_type=jnp.float32) + br_ref[...]
    else:
        # Identity residual uses the bf16-rounded x (x is DMA'd as bf16).
        r = x.astype(jnp.float32)
    out_ref[0] = jnp.maximum(y3 + r, 0.0).astype(out_ref.dtype)


# ---------------------------- wrapper ----------------------------

def conv_block_forward(x_nchw, params, *, stride=1, res_conv=False, return_x_2=True):
    if stride != 1:
        raise NotImplementedError("ConvBlock Pallas kernel supports stride=1 only")
    N, c1, H, W = x_nchw.shape
    c = params["w1"].shape[1]
    c2 = params["w3"].shape[1]
    if not res_conv:
        assert c1 == c2, "identity residual requires c1 == c2"

    ops, cp = _prepare_operands(params, res_conv)
    HW = H * W

    # NCHW -> (N, C, H*W) is a free reshape; bf16 halves the input DMA bytes.
    x_cm = x_nchw.reshape(N, c1, HW).astype(jnp.bfloat16)

    # Column-boundary masks for the 3x3 taps, built once on the host.
    col = jnp.arange(HW, dtype=jnp.int32) % W
    masks = jnp.stack([col != 0, col != (W - 1)]).astype(jnp.float32)   # (2, HW)

    args = [x_cm, masks, ops["w1t"], ops["b1"], ops["w2"], ops["b2"],
            ops["w3t"], ops["b3"]]
    in_specs = [
        pl.BlockSpec((1, c1, HW), lambda n: (n, 0, 0)),
        pl.BlockSpec((2, HW), lambda n: (0, 0)),
        pl.BlockSpec((cp, c1), lambda n: (0, 0)),
        pl.BlockSpec((cp, 1), lambda n: (0, 0)),
        pl.BlockSpec((cp, 9 * cp), lambda n: (0, 0)),
        pl.BlockSpec((cp, 1), lambda n: (0, 0)),
        pl.BlockSpec((c2, cp), lambda n: (0, 0)),
        pl.BlockSpec((c2, 1), lambda n: (0, 0)),
    ]
    if res_conv:
        args += [ops["wrt"], ops["br"]]
        in_specs += [pl.BlockSpec((c2, c1), lambda n: (0, 0)),
                     pl.BlockSpec((c2, 1), lambda n: (0, 0))]

    if return_x_2:
        out_shape = (jax.ShapeDtypeStruct((N, c2, HW), jnp.float32),
                     jax.ShapeDtypeStruct((N, c, HW), jnp.float32))
        out_specs = (pl.BlockSpec((1, c2, HW), lambda n: (n, 0, 0)),
                     pl.BlockSpec((1, c, HW), lambda n: (n, 0, 0)))
    else:
        out_shape = jax.ShapeDtypeStruct((N, c2, HW), jnp.float32)
        out_specs = pl.BlockSpec((1, c2, HW), lambda n: (n, 0, 0))

    kernel = functools.partial(_conv_block_kernel, W=W, c_x2=c,
                               res_conv=res_conv, return_x2=return_x_2)
    result = pl.pallas_call(
        kernel,
        out_shape=out_shape,
        grid=(N,),
        in_specs=in_specs,
        out_specs=out_specs,
        compiler_params=pltpu.CompilerParams(
            dimension_semantics=("parallel",),
            vmem_limit_bytes=48 * 1024 * 1024),
    )(*args)

    if return_x_2:
        out_cm, x2_cm = result
        return out_cm.reshape(N, c2, H, W), x2_cm.reshape(N, c, H, W)
    return result.reshape(N, c2, H, W)


# ---------------------------- parameters ----------------------------

def make_params(key, c1, c2, res_conv):
    c = c2 // 4  # expansion = 4

    def bn(n, base):
        i = jnp.arange(n, dtype=jnp.float32)
        gamma = 1.0 + 0.05 * jnp.cos(i + base)
        beta = 0.03 * jnp.sin(i + base)
        mean = 0.02 * jnp.cos(2.0 * i + base)
        var = 1.0 + 0.1 * (jnp.sin(i + base) ** 2)
        return gamma, beta, mean, var

    k1, k2, k3, k4 = jax.random.split(key, 4)
    params = dict(
        w1=0.3 * jax.random.normal(k1, (c1, c), jnp.float32),        # conv1 1x1
        w2=0.3 * jax.random.normal(k2, (3, 3, c, c), jnp.float32),   # conv2 3x3 (HWIO)
        w3=0.3 * jax.random.normal(k3, (c, c2), jnp.float32),        # conv3 1x1
        bn1=bn(c, 0.0), bn2=bn(c, 1.0), bn3=bn(c2, 2.0),
    )
    if res_conv:
        params["wr"] = 0.3 * jax.random.normal(k4, (c1, c2), jnp.float32)
        params["bnr"] = bn(c2, 3.0)
    return params


# ---------------------------- pure-JAX reference ----------------------------

def ref_forward(x_nchw, params, *, res_conv=False):
    """f32 reference using the same bf16-rounded operands as the kernel."""
    f = _fold_params(params, res_conv)
    q = lambda a: a.astype(jnp.bfloat16).astype(jnp.float32)
    dn = ("NHWC", "HWIO", "NHWC")
    c1, c = f["w1"].shape
    c2 = f["w3"].shape[1]

    def conv1x1(a, w):
        return lax.conv_general_dilated(a, w, (1, 1), "VALID", dimension_numbers=dn)

    x = q(jnp.transpose(x_nchw, (0, 2, 3, 1)).astype(jnp.float32))
    y = conv1x1(x, q(f["w1"]).reshape(1, 1, c1, c)) + f["b1"].reshape(1, 1, 1, c)
    y = q(jnp.maximum(y, 0.0))
    y = lax.conv_general_dilated(y, q(f["w2"]), (1, 1), ((1, 1), (1, 1)),
                                 dimension_numbers=dn)
    x2 = jnp.maximum(y + f["b2"].reshape(1, 1, 1, c), 0.0)
    y = conv1x1(q(x2), q(f["w3"]).reshape(1, 1, c, c2)) + f["b3"].reshape(1, 1, 1, c2)
    if res_conv:
        r = conv1x1(x, q(f["wr"]).reshape(1, 1, c1, c2)) + f["br"].reshape(1, 1, 1, c2)
    else:
        r = x
    out = jnp.maximum(y + r, 0.0)
    return jnp.transpose(out, (0, 3, 1, 2)), jnp.transpose(x2, (0, 3, 1, 2))


# ---------------------------- demo ----------------------------

if __name__ == "__main__":
    key = jax.random.PRNGKey(0)
    kx, kp, kxb, kpb = jax.random.split(key, 4)

    # Case 1: projection residual (res_conv=True, c1 != c2), return_x_2=True.
    c1, c2 = 4, 16
    x = jax.random.normal(kx, (2, c1, 16, 16), jnp.float32)        # NCHW, like PyTorch
    params = make_params(kp, c1, c2, res_conv=True)

    out, x2 = conv_block_forward(x, params, stride=1, res_conv=True, return_x_2=True)
    out = jax.block_until_ready(out)
    x2 = jax.block_until_ready(x2)

    ref_out, ref_x2 = ref_forward(x, params, res_conv=True)
    assert out.shape == (2, c2, 16, 16)
    assert x2.shape == (2, c2 // 4, 16, 16)
    assert jnp.allclose(out, ref_out, atol=1e-2, rtol=1e-2)
    assert jnp.allclose(x2, ref_x2, atol=1e-2, rtol=1e-2)

    # Case 2: identity residual (res_conv=False, c1 == c2), return_x_2=False
    # (exercises the kernel variant that skips the x2 compute/store entirely).
    c1b = c2b = 16
    xb = jax.random.normal(kxb, (2, c1b, 16, 16), jnp.float32)
    params_b = make_params(kpb, c1b, c2b, res_conv=False)

    outb = conv_block_forward(xb, params_b, stride=1, res_conv=False, return_x_2=False)
    outb = jax.block_until_ready(outb)
    ref_outb, _ = ref_forward(xb, params_b, res_conv=False)
    assert outb.shape == (2, c2b, 16, 16)
    assert jnp.allclose(outb, ref_outb, atol=1e-2, rtol=1e-2)

    print("KERNEL_OK")
</pallas_src>

<mosaic_0001>
module attributes {stable_mosaic.version = 11 : i64} {
  func.func @_conv_block_kernel(%arg0: i32, %arg1: memref<1x4x256xbf16, #tpu.memory_space<vmem>>, %arg2: memref<2x256xf32, #tpu.memory_space<vmem>>, %arg3: memref<8x4xbf16, #tpu.memory_space<vmem>>, %arg4: memref<8x1xf32, #tpu.memory_space<vmem>>, %arg5: memref<8x72xbf16, #tpu.memory_space<vmem>>, %arg6: memref<8x1xf32, #tpu.memory_space<vmem>>, %arg7: memref<16x8xbf16, #tpu.memory_space<vmem>>, %arg8: memref<16x1xf32, #tpu.memory_space<vmem>>, %arg9: memref<16x4xbf16, #tpu.memory_space<vmem>>, %arg10: memref<16x1xf32, #tpu.memory_space<vmem>>, %arg11: memref<1x16x256xf32, #tpu.memory_space<vmem>>, %arg12: memref<1x4x256xf32, #tpu.memory_space<vmem>>) attributes {dimension_semantics = [#tpu.dimension_semantics<parallel>], iteration_bounds = array<i64: 2>, scalar_prefetch = 0 : i64, scratch_operands = 0 : i64, tpu.core_type = #tpu.core_type<tc>, window_params = [{transform_indices = @transform_0, window_bounds = array<i64: 1, 4, 256>}, {pipeline_mode = #tpu.pipeline_mode<synchronous>, transform_indices = @transform_1, window_bounds = array<i64: 2, 256>}, {pipeline_mode = #tpu.pipeline_mode<synchronous>, transform_indices = @transform_2, window_bounds = array<i64: 8, 4>}, {pipeline_mode = #tpu.pipeline_mode<synchronous>, transform_indices = @transform_3, window_bounds = array<i64: 8, 1>}, {pipeline_mode = #tpu.pipeline_mode<synchronous>, transform_indices = @transform_4, window_bounds = array<i64: 8, 72>}, {pipeline_mode = #tpu.pipeline_mode<synchronous>, transform_indices = @transform_5, window_bounds = array<i64: 8, 1>}, {pipeline_mode = #tpu.pipeline_mode<synchronous>, transform_indices = @transform_6, window_bounds = array<i64: 16, 8>}, {pipeline_mode = #tpu.pipeline_mode<synchronous>, transform_indices = @transform_7, window_bounds = array<i64: 16, 1>}, {pipeline_mode = #tpu.pipeline_mode<synchronous>, transform_indices = @transform_8, window_bounds = array<i64: 16, 4>}, {pipeline_mode = #tpu.pipeline_mode<synchronous>, transform_indices = @transform_9, window_bounds = array<i64: 16, 1>}, {transform_indices = @transform_10, window_bounds = array<i64: 1, 16, 256>}, {transform_indices = @transform_11, window_bounds = array<i64: 1, 4, 256>}]} {
    %c0 = arith.constant 0 : index
    %c0_0 = arith.constant 0 : index
    %c0_1 = arith.constant 0 : index
    %0 = vector.load %arg1[%c0, %c0_0, %c0_1] : memref<1x4x256xbf16, #tpu.memory_space<vmem>>, vector<1x4x256xbf16>
    %1 = vector.shape_cast %0 : vector<1x4x256xbf16> to vector<4x256xbf16>
    %c0_2 = arith.constant 0 : index
    %c0_3 = arith.constant 0 : index
    %2 = vector.load %arg3[%c0_2, %c0_3] : memref<8x4xbf16, #tpu.memory_space<vmem>>, vector<8x4xbf16>
    %cst = arith.constant dense<0.000000e+00> : vector<8x256xf32>
    %3 = tpu.matmul %2, %1, %cst {dimension_numbers = #tpu.dot_dimension_numbers<[1], [0], [0], [1], [0, 0, 1, 1], [], []>} : vector<8x4xbf16>, vector<4x256xbf16>, vector<8x256xf32> -> vector<8x256xf32>
    %c0_4 = arith.constant 0 : index
    %c0_5 = arith.constant 0 : index
    %4 = vector.load %arg4[%c0_4, %c0_5] : memref<8x1xf32, #tpu.memory_space<vmem>>, vector<8x1xf32>
    %5 = vector.broadcast %4 : vector<8x1xf32> to vector<8x256xf32>
    %6 = arith.addf %3, %5 : vector<8x256xf32>
    %cst_6 = arith.constant 0.000000e+00 : f32
    %7 = vector.broadcast %cst_6 : f32 to vector<8x256xf32>
    %8 = arith.maximumf %6, %7 : vector<8x256xf32>
    %c0_7 = arith.constant 0 : index
    %c0_8 = arith.constant 0 : index
    %9 = vector.load %arg2[%c0_7, %c0_8] : memref<2x256xf32, #tpu.memory_space<vmem>>, vector<1x256xf32>
    %c1 = arith.constant 1 : index
    %c0_9 = arith.constant 0 : index
    %10 = vector.load %arg2[%c1, %c0_9] : memref<2x256xf32, #tpu.memory_space<vmem>>, vector<1x256xf32>
    %cst_10 = arith.constant 0.000000e+00 : f32
    %11 = vector.broadcast %cst_10 : f32 to vector<8x17xf32>
    %12 = vector.extract_strided_slice %8 {offsets = [0, 0], sizes = [8, 239], strides = [1, 1]} : vector<8x256xf32> to vector<8x239xf32>
    %13 = tpu.concatenate %11, %12 in 1 : vector<8x17xf32>, vector<8x239xf32> -> vector<8x256xf32>
    %14 = vector.broadcast %9 : vector<1x256xf32> to vector<8x256xf32>
    %15 = arith.mulf %13, %14 : vector<8x256xf32>
    %cst_11 = arith.constant 0.000000e+00 : f32
    %16 = vector.broadcast %cst_11 : f32 to vector<8x16xf32>
    %17 = vector.extract_strided_slice %8 {offsets = [0, 0], sizes = [8, 240], strides = [1, 1]} : vector<8x256xf32> to vector<8x240xf32>
    %18 = tpu.concatenate %16, %17 in 1 : vector<8x16xf32>, vector<8x240xf32> -> vector<8x256xf32>
    %cst_12 = arith.constant 0.000000e+00 : f32
    %19 = vector.broadcast %cst_12 : f32 to vector<8x15xf32>
    %20 = vector.extract_strided_slice %8 {offsets = [0, 0], sizes = [8, 241], strides = [1, 1]} : vector<8x256xf32> to vector<8x241xf32>
    %21 = tpu.concatenate %19, %20 in 1 : vector<8x15xf32>, vector<8x241xf32> -> vector<8x256xf32>
    %22 = vector.broadcast %10 : vector<1x256xf32> to vector<8x256xf32>
    %23 = arith.mulf %21, %22 : vector<8x256xf32>
    %cst_13 = arith.constant 0.000000e+00 : f32
    %24 = vector.broadcast %cst_13 : f32 to vector<8x1xf32>
    %25 = vector.extract_strided_slice %8 {offsets = [0, 0], sizes = [8, 255], strides = [1, 1]} : vector<8x256xf32> to vector<8x255xf32>
    %26 = tpu.concatenate %24, %25 in 1 : vector<8x1xf32>, vector<8x255xf32> -> vector<8x256xf32>
    %27 = vector.broadcast %9 : vector<1x256xf32> to vector<8x256xf32>
    %28 = arith.mulf %26, %27 : vector<8x256xf32>
    %cst_14 = arith.constant 0.000000e+00 : f32
    %29 = vector.broadcast %cst_14 : f32 to vector<8x1xf32>
    %30 = vector.extract_strided_slice %8 {offsets = [0, 1], sizes = [8, 255], strides = [1, 1]} : vector<8x256xf32> to vector<8x255xf32>
    %31 = tpu.concatenate %30, %29 in 1 : vector<8x255xf32>, vector<8x1xf32> -> vector<8x256xf32>
    %32 = vector.broadcast %10 : vector<1x256xf32> to vector<8x256xf32>
    %33 = arith.mulf %31, %32 : vector<8x256xf32>
    %cst_15 = arith.constant 0.000000e+00 : f32
    %34 = vector.broadcast %cst_15 : f32 to vector<8x15xf32>
    %35 = vector.extract_strided_slice %8 {offsets = [0, 15], sizes = [8, 241], strides = [1, 1]} : vector<8x256xf32> to vector<8x241xf32>
    %36 = tpu.concatenate %35, %34 in 1 : vector<8x241xf32>, vector<8x15xf32> -> vector<8x256xf32>
    %37 = vector.broadcast %9 : vector<1x256xf32> to vector<8x256xf32>
    %38 = arith.mulf %36, %37 : vector<8x256xf32>
    %cst_16 = arith.constant 0.000000e+00 : f32
    %39 = vector.broadcast %cst_16 : f32 to vector<8x16xf32>
    %40 = vector.extract_strided_slice %8 {offsets = [0, 16], sizes = [8, 240], strides = [1, 1]} : vector<8x256xf32> to vector<8x240xf32>
    %41 = tpu.concatenate %40, %39 in 1 : vector<8x240xf32>, vector<8x16xf32> -> vector<8x256xf32>
    %cst_17 = arith.constant 0.000000e+00 : f32
    %42 = vector.broadcast %cst_17 : f32 to vector<8x17xf32>
    %43 = vector.extract_strided_slice %8 {offsets = [0, 17], sizes = [8, 239], strides = [1, 1]} : vector<8x256xf32> to vector<8x239xf32>
    %44 = tpu.concatenate %43, %42 in 1 : vector<8x239xf32>, vector<8x17xf32> -> vector<8x256xf32>
    %45 = vector.broadcast %10 : vector<1x256xf32> to vector<8x256xf32>
    %46 = arith.mulf %44, %45 : vector<8x256xf32>
    %47 = tpu.concatenate %15, %18, %23, %28, %8, %33, %38, %41, %46 in 0 : vector<8x256xf32>, vector<8x256xf32>, vector<8x256xf32>, vector<8x256xf32>, vector<8x256xf32>, vector<8x256xf32>, vector<8x256xf32>, vector<8x256xf32>, vector<8x256xf32> -> vector<72x256xf32>
    %48 = arith.truncf %47 : vector<72x256xf32> to vector<72x256xbf16>
    %c0_18 = arith.constant 0 : index
    %c0_19 = arith.constant 0 : index
    %49 = vector.load %arg5[%c0_18, %c0_19] : memref<8x72xbf16, #tpu.memory_space<vmem>>, vector<8x72xbf16>
    %cst_20 = arith.constant dense<0.000000e+00> : vector<8x256xf32>
    %50 = tpu.matmul %49, %48, %cst_20 {dimension_numbers = #tpu.dot_dimension_numbers<[1], [0], [0], [1], [0, 0, 1, 1], [], []>} : vector<8x72xbf16>, vector<72x256xbf16>, vector<8x256xf32> -> vector<8x256xf32>
    %c0_21 = arith.constant 0 : index
    %c0_22 = arith.constant 0 : index
    %51 = vector.load %arg6[%c0_21, %c0_22] : memref<8x1xf32, #tpu.memory_space<vmem>>, vector<8x1xf32>
    %52 = vector.broadcast %51 : vector<8x1xf32> to vector<8x256xf32>
    %53 = arith.addf %50, %52 : vector<8x256xf32>
    %cst_23 = arith.constant 0.000000e+00 : f32
    %54 = vector.broadcast %cst_23 : f32 to vector<8x256xf32>
    %55 = arith.maximumf %53, %54 : vector<8x256xf32>
    %56 = vector.extract_strided_slice %55 {offsets = [0, 0], sizes = [4, 256], strides = [1, 1]} : vector<8x256xf32> to vector<4x256xf32>
    %c0_24 = arith.constant 0 : index
    %c0_25 = arith.constant 0 : index
    %c0_26 = arith.constant 0 : index
    %57 = vector.load %arg12[%c0_24, %c0_25, %c0_26] : memref<1x4x256xf32, #tpu.memory_space<vmem>>, vector<1x4x256xf32>
    %58 = vector.shape_cast %57 : vector<1x4x256xf32> to vector<4x256xf32>
    %59 = vector.shape_cast %56 : vector<4x256xf32> to vector<1x4x256xf32>
    tpu.vector_store %arg12[%c0_24, %c0_25, %c0_26], %59 {strides = array<i32>} : memref<1x4x256xf32, #tpu.memory_space<vmem>>, vector<1x4x256xf32>,
    %c0_27 = arith.constant 0 : index
    %c0_28 = arith.constant 0 : index
    %60 = vector.load %arg7[%c0_27, %c0_28] : memref<16x8xbf16, #tpu.memory_space<vmem>>, vector<16x8xbf16>
    %61 = arith.truncf %55 : vector<8x256xf32> to vector<8x256xbf16>
    %cst_29 = arith.constant dense<0.000000e+00> : vector<16x256xf32>
    %62 = tpu.matmul %60, %61, %cst_29 {dimension_numbers = #tpu.dot_dimension_numbers<[1], [0], [0], [1], [0, 0, 1, 1], [], []>} : vector<16x8xbf16>, vector<8x256xbf16>, vector<16x256xf32> -> vector<16x256xf32>
    %c0_30 = arith.constant 0 : index
    %c0_31 = arith.constant 0 : index
    %63 = vector.load %arg8[%c0_30, %c0_31] : memref<16x1xf32, #tpu.memory_space<vmem>>, vector<16x1xf32>
    %64 = vector.broadcast %63 : vector<16x1xf32> to vector<16x256xf32>
    %65 = arith.addf %62, %64 : vector<16x256xf32>
    %c0_32 = arith.constant 0 : index
    %c0_33 = arith.constant 0 : index
    %66 = vector.load %arg9[%c0_32, %c0_33] : memref<16x4xbf16, #tpu.memory_space<vmem>>, vector<16x4xbf16>
    %cst_34 = arith.constant dense<0.000000e+00> : vector<16x256xf32>
    %67 = tpu.matmul %66, %1, %cst_34 {dimension_numbers = #tpu.dot_dimension_numbers<[1], [0], [0], [1], [0, 0, 1, 1], [], []>} : vector<16x4xbf16>, vector<4x256xbf16>, vector<16x256xf32> -> vector<16x256xf32>
    %c0_35 = arith.constant 0 : index
    %c0_36 = arith.constant 0 : index
    %68 = vector.load %arg10[%c0_35, %c0_36] : memref<16x1xf32, #tpu.memory_space<vmem>>, vector<16x1xf32>
    %69 = vector.broadcast %68 : vector<16x1xf32> to vector<16x256xf32>
    %70 = arith.addf %67, %69 : vector<16x256xf32>
    %71 = arith.addf %65, %70 : vector<16x256xf32>
    %cst_37 = arith.constant 0.000000e+00 : f32
    %72 = vector.broadcast %cst_37 : f32 to vector<16x256xf32>
    %73 = arith.maximumf %71, %72 : vector<16x256xf32>
    %c0_38 = arith.constant 0 : index
    %c0_39 = arith.constant 0 : index
    %c0_40 = arith.constant 0 : index
    %74 = vector.load %arg11[%c0_38, %c0_39, %c0_40] : memref<1x16x256xf32, #tpu.memory_space<vmem>>, vector<1x16x256xf32>
    %75 = vector.shape_cast %74 : vector<1x16x256xf32> to vector<16x256xf32>
    %76 = vector.shape_cast %73 : vector<16x256xf32> to vector<1x16x256xf32>
    tpu.vector_store %arg11[%c0_38, %c0_39, %c0_40], %76 {strides = array<i32>} : memref<1x16x256xf32, #tpu.memory_space<vmem>>, vector<1x16x256xf32>,
    return
  }
  func.func @transform_0(%arg0: i32) -> (i32, i32, i32) {
    %c0_i32 = arith.constant 0 : i32
    %c0_i32_0 = arith.constant 0 : i32
    %c0_i32_1 = arith.constant 0 : i32
    return %arg0, %c0_i32, %c0_i32_0 : i32, i32, i32
  }
  func.func @transform_1(%arg0: i32) -> (i32, i32) {
    %c0_i32 = arith.constant 0 : i32
    %c0_i32_0 = arith.constant 0 : i32
    %c0_i32_1 = arith.constant 0 : i32
    return %c0_i32, %c0_i32_0 : i32, i32
  }
  func.func @transform_2(%arg0: i32) -> (i32, i32) {
    %c0_i32 = arith.constant 0 : i32
    %c0_i32_0 = arith.constant 0 : i32
    %c0_i32_1 = arith.constant 0 : i32
    return %c0_i32, %c0_i32_0 : i32, i32
  }
  func.func @transform_3(%arg0: i32) -> (i32, i32) {
    %c0_i32 = arith.constant 0 : i32
    %c0_i32_0 = arith.constant 0 : i32
    %c0_i32_1 = arith.constant 0 : i32
    return %c0_i32, %c0_i32_0 : i32, i32
  }
  func.func @transform_4(%arg0: i32) -> (i32, i32) {
    %c0_i32 = arith.constant 0 : i32
    %c0_i32_0 = arith.constant 0 : i32
    %c0_i32_1 = arith.constant 0 : i32
    return %c0_i32, %c0_i32_0 : i32, i32
  }
  func.func @transform_5(%arg0: i32) -> (i32, i32) {
    %c0_i32 = arith.constant 0 : i32
    %c0_i32_0 = arith.constant 0 : i32
    %c0_i32_1 = arith.constant 0 : i32
    return %c0_i32, %c0_i32_0 : i32, i32
  }
  func.func @transform_6(%arg0: i32) -> (i32, i32) {
    %c0_i32 = arith.constant 0 : i32
    %c0_i32_0 = arith.constant 0 : i32
    %c0_i32_1 = arith.constant 0 : i32
    return %c0_i32, %c0_i32_0 : i32, i32
  }
  func.func @transform_7(%arg0: i32) -> (i32, i32) {
    %c0_i32 = arith.constant 0 : i32
    %c0_i32_0 = arith.constant 0 : i32
    %c0_i32_1 = arith.constant 0 : i32
    return %c0_i32, %c0_i32_0 : i32, i32
  }
  func.func @transform_8(%arg0: i32) -> (i32, i32) {
    %c0_i32 = arith.constant 0 : i32
    %c0_i32_0 = arith.constant 0 : i32
    %c0_i32_1 = arith.constant 0 : i32
    return %c0_i32, %c0_i32_0 : i32, i32
  }
  func.func @transform_9(%arg0: i32) -> (i32, i32) {
    %c0_i32 = arith.constant 0 : i32
    %c0_i32_0 = arith.constant 0 : i32
    %c0_i32_1 = arith.constant 0 : i32
    return %c0_i32, %c0_i32_0 : i32, i32
  }
  func.func @transform_10(%arg0: i32) -> (i32, i32, i32) {
    %c0_i32 = arith.constant 0 : i32
    %c0_i32_0 = arith.constant 0 : i32
    %c0_i32_1 = arith.constant 0 : i32
    return %arg0, %c0_i32, %c0_i32_0 : i32, i32, i32
  }
  func.func @transform_11(%arg0: i32) -> (i32, i32, i32) {
    %c0_i32 = arith.constant 0 : i32
    %c0_i32_0 = arith.constant 0 : i32
    %c0_i32_1 = arith.constant 0 : i32
    return %arg0, %c0_i32, %c0_i32_0 : i32, i32, i32
  }
}

</mosaic_0001>

<bundles_post_ra>
// kernel: tpu_custom_call.1
= control target key start
LH: loop header
LB: loop body
LE: loop exit
PB: predicated region body
PF: predicated region fallthrough
CT: control target
= control target key end

     0   :  { %s1337_s0 = inlined_call_operand.vmem [shape: bf16[2,4,256], index: 0, kind: input, shape index: {}]   ;;  %s1338_s1 = inlined_call_operand.vmem [shape: f32[2,256], index: 1, kind: input, shape index: {}]   ;;  %s1339_s2 = inlined_call_operand.vmem [shape: bf16[8,4], index: 2, kind: input, shape index: {}]   ;;  %s1340_s3 = inlined_call_operand.vmem [shape: f32[8,1], index: 3, kind: input, shape index: {}]   ;;  %s1341_s4 = inlined_call_operand.vmem [shape: bf16[8,72], index: 4, kind: input, shape index: {}]   ;;  %s1342_s5 = inlined_call_operand.vmem [shape: f32[8,1], index: 5, kind: input, shape index: {}]   ;;  %s1343_s6 = inlined_call_operand.vmem [shape: bf16[16,8], index: 6, kind: input, shape index: {}]   ;;  %s1344_s7 = inlined_call_operand.vmem [shape: f32[16,1], index: 7, kind: input, shape index: {}]   ;;  %s1345_s8 = inlined_call_operand.vmem [shape: bf16[16,4], index: 8, kind: input, shape index: {}]   ;;  %s1346_s9 = inlined_call_operand.vmem [shape: f32[16,1], index: 9, kind: input, shape index: {}]   ;;  %s1347_s10 = inlined_call_operand.hbm [shape: f32[2,16,256], index: 10, kind: output, shape index: {0}]   ;;  %s1348_s11 = inlined_call_operand.hbm [shape: f32[2,4,256], index: 11, kind: output, shape index: {1}]  }
   0x1   :  { %1350 = sst [smem:[#allocation8_spill]] %s1337_s0 }
   0x2   :  { %1351 = sst [smem:[#allocation9_spill]] %s1338_s1 }
   0x3   :  { %1352 = sst [smem:[#allocation10_spill]] %s1339_s2 }
   0x4   :  { %1353 = sst [smem:[#allocation11_spill]] %s1340_s3 }
   0x5   :  { %1354 = sst [smem:[#allocation12_spill]] %s1341_s4 }
   0x6   :  { %1355 = sst [smem:[#allocation13_spill]] %s1342_s5 }
   0x7   :  { %17 = vsyncpa [#allocation3], 0 }
   0x8   :  { %19 = vsyncpa [#allocation3 + $0x1], 0 }
   0x9   :  { %20 = vsyncpa [#allocation5], 0 }
   0xa   :  { %22 = vsyncpa [#allocation5 + $0x1], 0  ;;  %s1146_s17 = smov 0   ;;  %s1148_s18 = smov 0  }
   0xb   :  { %s1150_s19 = smov 0   ;;  %s1152_s20 = smov 0  }
   0xc LB: > { %s1167_s21 = sadd.s32 4294967295, %s1073_s20   ;;  %s866_s22 = sadd.s32 4294967294, %s1073_s20   ;;  %s1073_s20 = sphi %s1152_s20, %s1368_s20   ;;  %s1069_s19 = sphi %s1150_s19, %s1367_s19   ;;  %s1065_s18 = sphi %s1148_s18, %s1366_s18   ;;  %s1061_s17 = sphi %s1146_s17, %s1365_s17  }
   0xd   : > { %s1171_s23 = sadd.s32 1, %s1073_s20   ;;  %s250_s24 = sadd.s32 1, %s1069_s19 }
   0xe   : > { %s247_s25 = ssub.s32 %s1073_s20, %s1171_s23  ;;  %p260_p0 = scmp.ne.s32.totalorder %s1069_s19, %s1065_s18 }
   0xf   : > { %p248_p1 = scmp.eq.s32.totalorder %s247_s25, 0  ;;  %p261_p2 = scmp.eq.s32.totalorder %s1167_s21, 1 }
  0x10   : > { %p266_p3 = scmp.ne.s32.totalorder %s1065_s18, %s1061_s17  ;;  %p267_p4 = scmp.eq.s32.totalorder %s866_s22, 1 }
  0x11   : > { %s1182_s26 = scalar_select %p248_p1, %s1069_s19, %s250_s24  }
  0x12   : > { %p1184_p5 = por %p261_p2, %p260_p0  ;;  %p1188_p6 = por %p267_p4, %p266_p3 }
  0x13   : > { %p869_p7 = scmp.ge.s32.totalorder %s1073_s20, 1  ;;  %p346_p8 = scmp.lt.s32.totalorder %s1073_s20, 3 }
  0x15   : > { %p347_p9 = pnand %p869_p7, %p346_p8 }
  0x16   : > { %p391_p10 = scmp.lt.s32.totalorder (!%p347_p9), %s1167_s21, 1  ;;  %s1358_s3 = sld [smem:[#allocation11_spill]] (!%p347_p9) }
  0x17   : > { %350 = sbr.rel (%p347_p9) target bundleno = 632 (0x278), region = 60  ;;  %s1359_s0 = sld [smem:[#allocation8_spill]] (!%p347_p9) }
  0x18   : > { %s1360_s2 = sld [smem:[#allocation10_spill]] (!%p347_p9)  ;;  %s1076_s25 = smov (!%p347_p9), 113  }
  0x19   : > { %s1077_s29 = smov (!%p347_p9), 111   ;;  %s1078_s30 = smov (!%p347_p9), 1  }
  0x1a   : > { %s1081_s14 = smov (!%p347_p9), 112   ;;  %s1082_s15 = smov (!%p347_p9), 17  }
  0x1b   : > { %s1361_s5 = sld [smem:[#allocation13_spill]] (!%p347_p9) }
  0x1c   : > { %v1075_v0 = vmov 0   ;;  %v399_v1 = vld [vmem:[%s1358_s3] sm:$0xff]  ;;  %s392_s12 = scalar_select %p391_p10, %s1167_s21, 1  ;;  %vm413_vm0 = vcmask 1041408   ;;  %vm409_vm1 = vcmask 31744   ;;  %vm538_vm2 = vcmask 908288  }
  0x1d   : > { %966 = vset.pattern.permute.xlu0 %v1075_v0  ;;  %977 = vset.pattern.permute.xlu1 %v1075_v0  ;;  %v668_v19 = vld [vmem:[%s1346_s9] sm:$0xff]  ;;  %s1362_s1 = sld [smem:[#allocation9_spill]]  ;;  %vm518_vm3 = vcmask 924672   ;;  %vm566_vm4 = vcmask 1043456   ;;  %vm507_vm5 = vcmask 1039360   ;;  %vm529_vm6 = vcmask 916480  }
  0x1e   : > { %402 = vperm.xlu0 %966, %v399_v1   ;;  %978 = vset.pattern.permute.xlu2 %v1075_v0  ;;  %s906_s13 = sshll.u32 %s392_s12, 2  ;;  %v398_v7 = vld [vmem:[%s1360_s2] sm:$0xf]  ;;  %s1079_s12 = smov 127   ;;  %vm1084_vm7 = vmmov 1   ;;  %vm480_vm9 = vcmask 121856  }
  0x1f   : > { %s395_s16 = scalar_lea.vmem %s1359_s0, %s906_s13  ;;  %s1080_s13 = smov 15   ;;  %vm882_vm8 = vmpackc.low %vm529_vm6, %vm1084_vm7  ;;  %vm496_vm10 = vcmask 7168   ;;  %vm455_vm11 = vcmask 138240   ;;  %vm471_vm12 = vcmask 130048   ;;  %vm562_vm15 = vcmask 588800  }
  0x20   : > { %v397_v2 = vld [vmem:[%s395_s16] sm:$0xf]  ;;  %s1349_s16 = smov 16   ;;  %vm877_vm13 = vmneg %vm471_vm12  ;;  %s1363_s4 = sld [smem:[#allocation12_spill]] }
  0x21   : > { %406 = vst [vmem:[#allocation1] ss:$4 sm:$0xff] %v397_v2  ;;  %v556_v18 = vld [vmem:[%s1361_s5] sm:$0xff]  ;;  %vm878_vm14 = vmpackc.low %vm877_vm13, %vm1084_vm7  ;;  %s999_s3 = scalar_lea.hbm %s1348_s11, 16 }
  0x23   : > { %v876_v22 = vld [vmem:[%s1362_s1 + $0x1] ss:$2 sm:$0x3]  ;;  %v446_v24 = vld [vmem:[%s1362_s1] ss:$2 sm:$0x3] }
  0x24   : > { %v487_v23 = vperm.slane %v876_v22, 1  ;;  %v1241_v29 = vperm.slane %v446_v24, 1  ;;  %v486_v33 = vperm.slane %v876_v22, 0  ;;  %v461_v47 = vperm.slane %v446_v24, 0 }
  0x28   : > { %v407_v3 = vld.sshfl [vmem:[#allocation1] sm:$0xff pattern:$0x73625140]  ;;  %v408_v4 = vld.sshfl [vmem:[#allocation1 + $0x8] sm:$0xff pattern:$0x73625140] }
  0x29   : > { %v414_v5 = vsel %vm413_vm0, %v407_v3, 0  ;;  %v416_v6 = vsel %vm413_vm0, %v408_v4, 0  ;;  %685 = vst [vmem:[#allocation1] ss:$4 sm:$0xff] %v397_v2 }
  0x2a   : > { %425 = vmatpush.bf16.msra.mxu2 %v414_v5  ;;  %438 = vmatpush.bf16.msra.mxu1 %v416_v6 }
  0x2d   : > { %874 = vmatmul.msk.bf16.vlgmr.msra.gmra.mxu2 %vm409_vm1, %v398_v7  ;;  %875 = vmatmul.msk.bf16.vlgmr.msra.gmra.mxu1 %vm409_vm1, %v398_v7 }
  0x90   : > { %v403_v8 = vpop.permute.xlu0 %402 }
  0xaa   : > { %v440_v9 = vpop.f32.mrf.mxu1 }
  0xab   : > { %v441_v10 = vadd.f32 %v440_v9, %v403_v8 }
  0xad   : > { %v1209_v11 = vmax.f32 %v441_v10, 0.0 }
  0xaf   : > { %516 = vrot.lane.b32.xlu2 %v1209_v11, %s1076_s25  ;;  %536 = vrot.lane.b32.xlu1 %v1209_v11, %s1077_s29 }
  0xb0   : > { %v427_v12 = vpop.f32.mrf.mxu2 }
  0xb1   : > { %v428_v13 = vadd.f32 %v427_v12, %v403_v8 }
  0xb2   : > { %v442_v14 = vpop.f32.mrf.mxu1 }
  0xb3   : > { %v1213_v15 = vmax.f32 %v428_v13, 0.0 }
  0xb5   : > { %534 = vrot.lane.b32.xlu0 %v1213_v15, %s1077_s29  ;;  %v967_v17 = vpack.i.bf16 %v1209_v11, %v1213_v15 }
  0xb7   : > { %494 = vrot.lane.b32.xlu2 %v1209_v11, %s1078_s30  ;;  %505 = vrot.lane.b32.xlu1 %v1209_v11, %s1079_s12 }
  0xb8   : > { %v429_v16 = vpop.f32.mrf.mxu2 }
  0xbd   : > { %478 = vrot.lane.b32.xlu0 %v1209_v11, %s1080_s13 }
  0xbf   : > { %968 = vrot.lane.b32.xlu2 %v967_v17, %s1081_s14  ;;  %514 = vrot.lane.b32.xlu1 %v1213_v15, %s1076_s25  ;;  %s1272_s14 = sand.u32 1, %s1065_s18  }
  0xc0   : > { %s741_s0 = scalar_lea.sflag [#allocation5], %s1272_s14 }
  0xc5   : > { %503 = vrot.lane.b32.xlu0 %v1213_v15, %s1079_s12  ;;  %s910_s12 = sshll.u32 %s1167_s21, 3 }
  0xc6   : > { %s769_s24 = scalar_lea.hbm %s1348_s11, %s910_s12 }
  0xc7   : > { %476 = vrot.lane.b32.xlu2 %v1213_v15, %s1080_s13  ;;  %492 = vrot.lane.b32.xlu1 %v1213_v15, %s1078_s30 }
  0xcd   : > { %451 = vrot.lane.b32.xlu0 %v1213_v15, %s1082_s15 }
  0xcf   : > { %973 = vrot.lane.b32.xlu2 %v967_v17, %s1349_s16  ;;  %453 = vrot.lane.b32.xlu1 %v1209_v11, %s1082_s15  ;;  %s871_s15 = sshll.u32 %s1272_s14, 3 }
  0xd0   : > { %s390_s25 = scalar_lea.vmem [#allocation4], %s871_s15  ;;  %s773_s15 = sshll.u32 %s769_s24, 4  ;;  %s774_s15 = int_to_ptr.hbm [resolvable:$true] %s773_s15 }
  0xd1   : > { %s771_s16 = sshll.u32 %s390_s25, 4  ;;  %s993_s1 = sshra.s32 %s774_s15, 4  ;;  %s772_s16 = int_to_ptr.vmem [resolvable:$true] %s771_s16  ;;  %s994_s1 = int_to_ptr.hbm [resolvable:$true] %s993_s1 }
  0xd2   : > { %s995_s2 = scalar_lea.hbm %s994_s1, 8  ;;  %p1000_p0 = scmp.lt.s32.totalorder %s994_s1, %s1348_s11 }
  0xd3   : > { %p996_p11 = scmp.ne.s32.totalorder %s994_s1, %s995_s2  ;;  %p1001_p1 = scmp.lt.s32.totalorder %s999_s3, %s995_s2 }
  0xd5   : > { %559 = vperm.xlu0 %966, %v556_v18   ;;  %v555_v18 = vld [vmem:[%s1363_s4] sm:$0xf]  ;;  %p997_p12 = pnand %p996_p11, %p1184_p5  ;;  %p1002_p2 = por %p1001_p1, %p1000_p0 }
  0xd7   : > { %p998_p13 = pneg %p997_p12 }
  0xd9   : > { %p1003_p3 = pnand %p1002_p2, %p998_p13 }
  0xdd   : > { %672 = vperm.xlu0 %966, %v668_v19   ;;  %v611_v19 = vld [vmem:[%s1344_s7] sm:$0xff] }
  0xde   : > { %615 = vperm.xlu1 %977, %v611_v19  }
 0x109   : > { %v517_v20 = vpop.permute.xlu2 %516 }
 0x10a   : > { %v522_v30 = vsel %vm518_vm3, %v517_v20, 0.0 }
 0x10b   : > { %v524_v36 = vmul.f32 %v522_v30, %v1241_v29 }
 0x111   : > { %v495_v21 = vpop.permute.xlu2 %494 }
 0x119   : > { %v969_v27 = vpop.permute.xlu2 %968 }
 0x11a   : > { %v971_v32 = vunpack.i.h.bf16 %v969_v27  ;;  %v970_v48 = vunpack.i.l.bf16 %v969_v27 }
 0x11c   : > { %v883_v40 = vpack.c.bf16 %v971_v32, %v524_v36  ;;  %v530_v53 = vsel %vm529_vm6, %v970_v48, %v971_v32  ;;  %v907_v36 = vld [vmem:[%s1343_s6] sm:$0xff] }
 0x121   : > { %v537_v25 = vpop.permute.xlu1 %536  ;;  %v477_v51 = vpop.permute.xlu2 %476 }
 0x122   : > { %v542_v26 = vsel %vm538_vm2, %v537_v25, 0.0  ;;  %v484_v60 = vsel %vm480_vm9, 0.0, %v477_v51 }
 0x123   : > { %v544_v28 = vmul.f32 %v542_v26, %v487_v23  ;;  %v490_v3 = vmul.f32 %v486_v33, %v484_v60 }
 0x125   : > { %v554_v31 = vpack.c.bf16 %v544_v28, %v544_v28  ;;  %v686_v28 = vld.sshfl [vmem:[#allocation1] sm:$0xff pattern:$0x73625140] }
 0x126   : > { %v691_v32 = vsel %vm413_vm0, %v686_v28, 0 }
 0x127   : > { %v535_v34 = vpop.permute.xlu0 %534  ;;  %v571_v35 = vsel %vm566_vm4, %v554_v31, 0  ;;  %v687_v31 = vld.sshfl [vmem:[#allocation1 + $0x8] sm:$0xff pattern:$0x73625140] }
 0x128   : > { %v539_v37 = vsel %vm538_vm2, %v535_v34, %v537_v25  ;;  %589 = vmatpush.bf16.msra.mxu3 %v571_v35  ;;  %vm628_vm2 = vcmask 64512  }
 0x129   : > { %v543_v38 = vmul.f32 %v539_v37, %v486_v33  ;;  %v506_v39 = vpop.permute.xlu1 %505  ;;  %v974_v4 = vpop.permute.xlu2 %973 }
 0x12a   : > { %v511_v41 = vsel %vm507_vm5, %v506_v39, 0.0  ;;  %v976_v8 = vunpack.i.h.bf16 %v974_v4  ;;  %v975_v9 = vunpack.i.l.bf16 %v974_v4 }
 0x12b   : > { %v513_v42 = vmul.f32 %v511_v41, %v487_v23  ;;  %v553_v43 = vpack.c.bf16 %v543_v38, %v543_v38  ;;  %v693_v38 = vsel %vm413_vm0, %v687_v31, 0 }
 0x12c   : > { %884 = vmatpush.bf16.msk.msra.mxu3 %vm882_vm8, %v883_v40  ;;  %v472_v16 = vsel %vm471_vm12, %v975_v9, %v976_v8 }
 0x12d   : > { %v568_v44 = vsel %vm566_vm4, %v553_v43, 0  ;;  %v550_v45 = vpack.c.bf16 %v513_v42, %v1209_v11  ;;  %v908_v42 = vld [vmem:[%s1345_s8] sm:$0xff] }
 0x12e   : > { %576 = vmatpush.bf16.msrb.mxu2 %v568_v44 }
 0x12f   : > { %v479_v46 = vpop.permute.xlu0 %478 }
 0x130   : > { %591 = vmatpush.bf16.msra.mxu3 %v550_v45  ;;  %v481_v56 = vsel %vm480_vm9, %v477_v51, %v479_v46 }
 0x131   : > { %v515_v49 = vpop.permute.xlu1 %514  ;;  %v491_v63 = vmul.f32 %v487_v23, %v481_v56 }
 0x132   : > { %v519_v50 = vsel %vm518_vm3, %v515_v49, %v517_v20  ;;  %v669_v20 = vld [vmem:[%s1346_s9 + $0x8] sm:$0xff] }
 0x133   : > { %v523_v52 = vmul.f32 %v519_v50, %v461_v47  ;;  %677 = vperm.xlu1 %977, %v669_v20  }
 0x135   : > { %v551_v54 = vpack.c.bf16 %v530_v53, %v523_v52 }
 0x137   : > { %577 = vmatpush.bf16.msrb.mxu2 %v551_v54  ;;  %v504_v55 = vpop.permute.xlu0 %503 }
 0x138   : > { %v508_v57 = vsel %vm507_vm5, %v504_v55, %v506_v39 }
 0x139   : > { %v512_v58 = vmul.f32 %v508_v57, %v486_v33  ;;  %v493_v59 = vpop.permute.xlu1 %492 }
 0x13a   : > { %v497_v61 = vsel %vm496_vm10, %v493_v59, %v495_v21  ;;  %v500_v62 = vsel %vm496_vm10, 0.0, %v493_v59  ;;  %v612_v21 = vld [vmem:[%s1344_s7 + $0x8] sm:$0xff] }
 0x13b   : > { %v501_v0 = vmul.f32 %v500_v62, %v461_v47  ;;  %v502_v1 = vmul.f32 %v497_v61, %v1241_v29  ;;  %v549_v2 = vpack.c.bf16 %v512_v58, %v1213_v15  ;;  %620 = vperm.xlu2 %978, %v612_v21  }
 0x13d   : > { %578 = vmatpush.bf16.msrb.mxu2 %v549_v2  ;;  %v548_v5 = vpack.c.bf16 %v502_v1, %v491_v63  ;;  %v547_v7 = vpack.c.bf16 %v501_v0, %v490_v3 }
 0x13f   : > { %592 = vmatpush.bf16.msra.mxu3 %v548_v5  ;;  %v452_v6 = vpop.permute.xlu0 %451 }
 0x140   : > { %v459_v10 = vsel %vm455_vm11, 0.0, %v452_v6 }
 0x141   : > { %v465_v11 = vmul.f32 %v461_v47, %v459_v10  ;;  %v454_v12 = vpop.permute.xlu1 %453  ;;  %579 = vmatpush.bf16.msrb.mxu2 %v547_v7 }
 0x142   : > { %v456_v13 = vsel %vm455_vm11, %v452_v6, %v454_v12 }
 0x143   : > { %v466_v14 = vmul.f32 %v1241_v29, %v456_v13  ;;  %v879_v15 = vpack.c.bf16 %v975_v9, %v465_v11 }
 0x145   : > { %880 = vmatpush.bf16.msk.msrb.mxu2 %vm878_vm14, %v879_v15  ;;  %v546_v17 = vpack.c.bf16 %v472_v16, %v466_v14 }
 0x147   : > { %593 = vmatpush.bf16.msra.mxu3 %v546_v17  ;;  %v560_v22 = vpop.permute.xlu0 %559 }
 0x148   : > { %881 = vmatmul.msk.bf16.vlgmr.msrb.gmra.mxu2 %vm562_vm15, %v555_v18 }
 0x14a   : > { %885 = vmatmul.msk.bf16.vlgmr.msra.gmra.mxu3 %vm562_vm15, %v555_v18 }
 0x1cb   : > { %v582_v23 = vpop.f32.mrf.mxu2 }
 0x1cc   : > { %v583_v24 = vadd.f32 %v582_v23, %v560_v22 }
 0x1cd   : > { %v595_v25 = vpop.f32.mrf.mxu3 }
 0x1ce   : > { %v599_v26 = vmax.f32 %v583_v24, 0.0  ;;  %v596_v27 = vadd.f32 %v595_v25, %v560_v22 }
 0x1d0   : > { %v600_v29 = vmax.f32 %v596_v27, 0.0  ;;  %v609_v30 = vpack.c.bf16 %v599_v26, %v599_v26 }
 0x1d2   : > { %v603_v33 = vrot.slane %v600_v29, 4  ;;  %v633_v34 = vsel %vm566_vm4, %v609_v30, 0  ;;  %v610_v35 = vpack.c.bf16 %v600_v29, %v600_v29 }
 0x1d3   : > { %645 = vmatpush.bf16.msra.mxu0 %v633_v34  ;;  %v584_v37 = vpop.f32.mrf.mxu2 }
 0x1d4   : > { %v636_v39 = vsel %vm566_vm4, %v610_v35, 0  ;;  %v604_v40 = vsel %vm566_vm4, %v599_v26, %v603_v33 }
 0x1d5   : > { %v597_v41 = vpop.f32.mrf.mxu3  ;;  %659 = vmatpush.bf16.msrb.mxu1 %v636_v39  ;;  %606 = vst [vmem:[%s390_s25] sm:$0xff] %v604_v40 }
 0x1d6   : > { %890 = vmatmul.msk.bf16.vlgmr.msra.gmra.mxu0 %vm628_vm2, %v907_v36 }
 0x1d7   : > { %702 = vmatpush.bf16.msrb.mxu0 %v691_v32 }
 0x1d8   : > { %891 = vmatmul.msk.bf16.vlgmr.msrb.gmra.mxu1 %vm628_vm2, %v907_v36 }
 0x1d9   : > { %716 = vmatpush.bf16.msra.mxu1 %v693_v38 }
 0x1e6   : > { %896 = vmatmul.msk.bf16.vlgmr.msrb.gmra.mxu0 %vm409_vm1, %v908_v42 }
 0x1e8   : > { %897 = vmatmul.msk.bf16.vlgmr.msra.gmra.mxu1 %vm409_vm1, %v908_v42 }
 0x1e9   : > { %1006 = shalt.err (!%p1003_p3)
}
 0x1ea   : > { %912 = dma.vmem_to_hbm [thread:$0]  (%p1184_p5), %s772_s16, 128, %s774_s15, %s741_s0   ;;  %v616_v47 = vpop.permute.xlu1 %615  ;;  %v673_v48 = vpop.permute.xlu0 %672 }
 0x1eb   : > { %s870_s25 = sshll.u32 %s1272_s14, 5  ;;  %v621_v58 = vpop.permute.xlu2 %620  ;;  %s909_s1 = sshll.u32 %s1167_s21, 5 }
 0x1ec   : > { %s383_s0 = scalar_lea.vmem [#allocation2], %s870_s25  ;;  %s752_s4 = scalar_lea.hbm %s1347_s10, %s909_s1 }
 0x1ed   : > { %s753_s5 = sshll.u32 %s383_s0, 4  ;;  %s755_s21 = sshll.u32 %s752_s4, 4  ;;  %s754_s5 = int_to_ptr.vmem [resolvable:$true] %s753_s5  ;;  %s756_s21 = int_to_ptr.hbm [resolvable:$true] %s755_s21 }
 0x1ee   : > { %s736_s16 = scalar_lea.sflag [#allocation3], %s1272_s14  ;;  %s1021_s12 = sshra.s32 %s756_s21, 4  ;;  %s1022_s12 = int_to_ptr.hbm [resolvable:$true] %s1021_s12 }
 0x1ef   : > { %s1023_s13 = scalar_lea.hbm %s1022_s12, 32  ;;  %s1027_s15 = scalar_lea.hbm %s1347_s10, 64 }
 0x1f0   : > { %p1024_p4 = scmp.ne.s32.totalorder %s1022_s12, %s1023_s13  ;;  %p1028_p9 = scmp.lt.s32.totalorder %s1022_s12, %s1347_s10 }
 0x1f1   : > { %p1029_p10 = scmp.lt.s32.totalorder %s1027_s15, %s1023_s13 }
 0x1f2   : > { %v678_v60 = vpop.permute.xlu1 %677  ;;  %p1025_p7 = pnand %p1024_p4, %p1184_p5 }
 0x1f3   : > { %p1030_p11 = por %p1029_p10, %p1028_p9 }
 0x1f4   : > { %p1026_p8 = pneg %p1025_p7 }
 0x1f6   : > { %p1031_p12 = pnand %p1030_p11, %p1026_p8 }
 0x253   : > { %v647_v43 = vpop.f32.mrf.mxu0 }
 0x254   : > { %v648_v50 = vadd.f32 %v647_v43, %v616_v47 }
 0x255   : > { %v661_v44 = vpop.f32.mrf.mxu1 }
 0x256   : > { %v662_v53 = vadd.f32 %v661_v44, %v616_v47 }
 0x25b   : > { %v649_v45 = vpop.f32.mrf.mxu0 }
 0x25c   : > { %v650_v62 = vadd.f32 %v649_v45, %v621_v58 }
 0x25d   : > { %v663_v46 = vpop.f32.mrf.mxu1 }
 0x25e   : > { %v664_v1 = vadd.f32 %v663_v46, %v621_v58 }
 0x263   : > { %v704_v49 = vpop.f32.mrf.mxu0 }
 0x264   : > { %v705_v51 = vadd.f32 %v704_v49, %v673_v48 }
 0x265   : > { %v718_v52 = vpop.f32.mrf.mxu1 }
 0x266   : > { %v723_v54 = vadd.f32 %v705_v51, %v648_v50  ;;  %v719_v55 = vadd.f32 %v718_v52, %v673_v48 }
 0x268   : > { %v727_v56 = vmax.f32 %v723_v54, 0.0  ;;  %v724_v57 = vadd.f32 %v719_v55, %v662_v53 }
 0x26a   : > { %731 = vst [vmem:[%s383_s0] sm:$0xff] %v727_v56  ;;  %v728_v59 = vmax.f32 %v724_v57, 0.0 }
 0x26b   : > { %v706_v61 = vpop.f32.mrf.mxu0 }
 0x26c   : > { %732 = vst [vmem:[%s383_s0 + $0x8] sm:$0xff] %v728_v59  ;;  %v707_v63 = vadd.f32 %v706_v61, %v678_v60 }
 0x26d   : > { %v720_v0 = vpop.f32.mrf.mxu1 }
 0x26e   : > { %v725_v2 = vadd.f32 %v707_v63, %v650_v62  ;;  %v721_v3 = vadd.f32 %v720_v0, %v678_v60 }
 0x270   : > { %v729_v4 = vmax.f32 %v725_v2, 0.0  ;;  %v726_v5 = vadd.f32 %v721_v3, %v664_v1 }
 0x272   : > { %733 = vst [vmem:[%s383_s0 + $0x10] sm:$0xff] %v729_v4  ;;  %v730_v6 = vmax.f32 %v726_v5, 0.0 }
 0x274   : > { %734 = vst [vmem:[%s383_s0 + $0x18] sm:$0xff] %v730_v6 }
 0x275   : > { %1034 = shalt.err (!%p1031_p12)
}
 0x276   : > { %s1085_s14 = smov 256   ;;  %s1364_s25 = smov 16  }
 0x277   : > { %911 = dma.vmem_to_hbm [thread:$0]  (%p1184_p5), %s754_s5, 512, %s756_s21, %s736_s16, %s1085_s14, %s1085_s14, %s1364_s25  }
 0x278 PF: > { %p922_p13 = scmp.ge.s32.totalorder %s1073_s20, 2  ;;  %s785_s1 = sand.u32 1, %s1061_s17  }
 0x279   : > { %s786_s0 = scalar_lea.sflag [#allocation3], %s785_s1 }
 0x27a   : > { %p916_p0 = pnand %p922_p13, %p1188_p6 }
 0x27c   : > { %p917_p1 = pneg %p916_p0 }
 0x27e   : > { %1052 = dma.done.wait (%p917_p1), %s786_s0, 512  }
 0x27f   : > { %1054 = vsyncadd (%p917_p1), %s786_s0, 4294966784  ;;  %s796_s2 = scalar_lea.sflag [#allocation5], %s785_s1 }
 0x280   : > { %1056 = dma.done.wait (%p917_p1), %s796_s2, 128  }
 0x281   : > { %1058 = vsyncadd (%p917_p1), %s796_s2, 4294967168  ;;  %p25_p5 = scmp.ge.s32.totalorder %s1171_s23, 4   ;;  %s1365_s17 = smov %s1065_s18 }
 0x282   : > { %s1366_s18 = smov %s1069_s19  ;;  %s1367_s19 = smov %s1182_s26 }
 0x283   : > { %s1368_s20 = smov %s1171_s23  ;;  %27 = sbr.rel (!%p25_p5) target bundleno = 12 (0xc), region = 113 }
 0x288   :  { %802 = vsyncpa [#allocation3], 1 }
 0x289   :  { %804 = vsyncpa [#allocation3 + $0x1], 1 }
 0x28a   :  { %805 = vsyncpa [#allocation5], 1 }
 0x28b   :  { %807 = vsyncpa [#allocation5 + $0x1], 1 }

</bundles_post_ra>
